<compile_context>
chip_gen: v7x
topology: tpu7x:2x2x1
jax: 0.10.0
libtpu: 0.0.40
codegen_flags: <defaults>
</compile_context>

<pallas_src>
import math
import functools

import jax
import jax.numpy as jnp
from jax.experimental import pallas as pl
from jax.experimental.pallas import tpu as pltpu

_BN_EPS = 1e-5
_NEG_INF = -1e30                      # finite mask sentinel
_VMEM_LIMIT = 48 * 1024 * 1024        # <= v7x 64 MiB ceiling; plenty on v5e/v6e


# ----------------------------------------------------------------------------
# in-kernel helpers
# ----------------------------------------------------------------------------
def _gelu(x):
    # tanh-approximate GELU: tanh lowers to the EUP (own VLIW slot).
    c = jnp.float32(math.sqrt(2.0 / math.pi))
    return 0.5 * x * (1.0 + jnp.tanh(c * (x + jnp.float32(0.044715) * x * x * x)))


def _pick_tile(dim, target, align):
    """Largest tile <= target that exactly divides `dim` (multiples of `align`)."""
    if dim <= target:
        return dim
    t = (target // align) * align
    while t >= align:
        if dim % t == 0:
            return t
        t -= align
    return dim


def _bn_affine(stats, gamma, beta, n_tokens):
    """Hoisted BatchNorm affine: tiny XLA op on (2, N) stats -> (scale, shift)."""
    inv_n = jnp.float32(1.0 / n_tokens)
    mean = stats[0] * inv_n
    var = stats[1] * inv_n - mean * mean          # biased variance
    var = jnp.maximum(var, 0.0)                   # guard cancellation
    inv_std = jax.lax.rsqrt(var + jnp.float32(_BN_EPS))
    scale = gamma * inv_std
    shift = beta - mean * scale
    return scale.astype(jnp.float32), shift.astype(jnp.float32)


# ----------------------------------------------------------------------------
# generic tiled matmul with fused BN-prologue / GELU / positional-encoding epilogue
# ----------------------------------------------------------------------------
def _matmul_kernel(*refs, n_k, bn_in, pre_gelu, post_gelu, scale, has_pe):
    idx = 3
    x_ref, w_ref, b_ref = refs[0], refs[1], refs[2]
    if bn_in:
        sc_ref, sh_ref = refs[idx], refs[idx + 1]
        idx += 2
    if has_pe:
        pe_ref = refs[idx]
        idx += 1
    o_ref, acc_ref = refs[idx], refs[idx + 1]

    k = pl.program_id(2)

    @pl.when(k == 0)
    def _():
        acc_ref[...] = jnp.zeros_like(acc_ref)

    x = x_ref[...]
    if bn_in:
        x = x.astype(jnp.float32) * sc_ref[...] + sh_ref[...]
    if pre_gelu:
        x = _gelu(x.astype(jnp.float32))
    acc_ref[...] += jnp.dot(x.astype(jnp.bfloat16), w_ref[...],
                            preferred_element_type=jnp.float32)

    @pl.when(k == n_k - 1)
    def _():
        y = acc_ref[...] + b_ref[...]
        if scale != 1.0:
            y = y * jnp.float32(scale)
        if has_pe:
            y = y + pe_ref[...]
        if post_gelu:
            y = _gelu(y)
        o_ref[...] = y.astype(o_ref.dtype)


def matmul_fused(x, w, b, *, bn=None, pe=None, pre_gelu=False, post_gelu=False,
                 scale=1.0, out_dtype=jnp.bfloat16,
                 tm_target=512, tn_target=512, tk_target=512):
    m, kdim = x.shape
    n = w.shape[1]
    if pe is not None:
        # token-row tile aligned to sequence positions so the PE tile is picked purely
        # from the grid index (PE stays (S, D); never broadcast to (B*S, D) in HBM
        # unless S is not 8-aligned with B>1 -> wrapper passes a tiled (B*S, D) PE).
        tm = _pick_tile(pe.shape[0], tm_target, 8)
    else:
        tm = _pick_tile(m, tm_target, 8)
    tn = _pick_tile(n, tn_target, 128)
    tk = _pick_tile(kdim, tk_target, 128)
    grid = (m // tm, n // tn, kdim // tk)
    n_k = grid[2]

    in_specs = [
        pl.BlockSpec((tm, tk), lambda i, j, k: (i, k)),
        pl.BlockSpec((tk, tn), lambda i, j, k: (k, j)),
        pl.BlockSpec((1, tn), lambda i, j, k: (0, j)),
    ]
    args = [x, w, b.reshape(1, n)]
    if bn is not None:
        bsc, bsh = bn
        in_specs += [
            pl.BlockSpec((1, tk), lambda i, j, k: (0, k)),
            pl.BlockSpec((1, tk), lambda i, j, k: (0, k)),
        ]
        args += [bsc.reshape(1, kdim), bsh.reshape(1, kdim)]
    if pe is not None:
        sb = pe.shape[0] // tm
        in_specs.append(pl.BlockSpec((tm, tn), lambda i, j, k, sb=sb: (i % sb, j)))
        args.append(pe)

    kernel = functools.partial(
        _matmul_kernel, n_k=n_k, bn_in=bn is not None,
        pre_gelu=pre_gelu, post_gelu=post_gelu, scale=scale, has_pe=pe is not None)

    return pl.pallas_call(
        kernel,
        grid=grid,
        in_specs=in_specs,
        out_specs=pl.BlockSpec((tm, tn), lambda i, j, k: (i, j)),
        out_shape=jax.ShapeDtypeStruct((m, n), out_dtype),
        scratch_shapes=[pltpu.VMEM((tm, tn), jnp.float32)],
        compiler_params=pltpu.CompilerParams(
            dimension_semantics=("parallel", "parallel", "arbitrary"),
            vmem_limit_bytes=_VMEM_LIMIT),
    )(*args)


# ----------------------------------------------------------------------------
# matmul (full-K resident weight) + bias + residual (optionally BN of residual source)
# + per-M-tile partial BN sum/sumsq stats  (single "parallel" grid axis)
# ----------------------------------------------------------------------------
def _matmul_res_stats_kernel(*refs, res_bn):
    if res_bn:
        x_ref, w_ref, b_ref, r_ref, sc_ref, sh_ref, y_ref, st_ref = refs
    else:
        x_ref, w_ref, b_ref, r_ref, y_ref, st_ref = refs

    acc = jnp.dot(x_ref[...].astype(jnp.bfloat16), w_ref[...],
                  preferred_element_type=jnp.float32)
    res = r_ref[...].astype(jnp.float32)
    if res_bn:
        res = res * sc_ref[...] + sh_ref[...]
    y = acc + b_ref[...] + res
    y_ref[...] = y.astype(y_ref.dtype)

    st = jnp.concatenate(
        [jnp.sum(y, axis=0, keepdims=True),
         jnp.sum(y * y, axis=0, keepdims=True)], axis=0)       # (2, N) f32
    st_ref[0] = st


def matmul_residual_stats(x, w, b, residual, *, res_bn=None, tm_target=512):
    m, kdim = x.shape
    n = w.shape[1]
    tm = _pick_tile(m, tm_target, 8)
    n_tiles = m // tm

    in_specs = [
        pl.BlockSpec((tm, kdim), lambda i: (i, 0)),
        pl.BlockSpec((kdim, n), lambda i: (0, 0)),   # weight resident in VMEM
        pl.BlockSpec((1, n), lambda i: (0, 0)),
        pl.BlockSpec((tm, n), lambda i: (i, 0)),
    ]
    args = [x, w, b.reshape(1, n), residual]
    if res_bn is not None:
        rsc, rsh = res_bn
        in_specs += [
            pl.BlockSpec((1, n), lambda i: (0, 0)),
            pl.BlockSpec((1, n), lambda i: (0, 0)),
        ]
        args += [rsc.reshape(1, n), rsh.reshape(1, n)]

    kernel = functools.partial(_matmul_res_stats_kernel, res_bn=res_bn is not None)

    y, partial = pl.pallas_call(
        kernel,
        grid=(n_tiles,),
        in_specs=in_specs,
        out_specs=(
            pl.BlockSpec((tm, n), lambda i: (i, 0)),
            pl.BlockSpec((1, 2, n), lambda i: (i, 0, 0)),   # per-tile partial stats
        ),
        out_shape=(
            jax.ShapeDtypeStruct((m, n), jnp.bfloat16),
            jax.ShapeDtypeStruct((n_tiles, 2, n), jnp.float32),
        ),
        compiler_params=pltpu.CompilerParams(
            dimension_semantics=("parallel",),
            vmem_limit_bytes=_VMEM_LIMIT),
    )(*args)

    stats = jnp.sum(partial, axis=0)                      # (2, n), tiny XLA reduce
    return y, stats


# ----------------------------------------------------------------------------
# multi-head self-attention: BB batch rows + all heads per grid step
# ----------------------------------------------------------------------------
def _attention_kernel(qkv_ref, bias_ref, o_ref, *, n_heads, scale):
    d_model = qkv_ref.shape[2] // 3
    dh = d_model // n_heads

    qkv = qkv_ref[...]                     # (bb, s, 3D) bf16
    bias = bias_ref[...]                   # (bb, 1, s)  f32 additive key-padding bias

    for h in range(n_heads):               # unrolled; one head live at a time
        q = qkv[:, :, h * dh:(h + 1) * dh]
        k = qkv[:, :, d_model + h * dh:d_model + (h + 1) * dh]
        v = qkv[:, :, 2 * d_model + h * dh:2 * d_model + (h + 1) * dh]
        s = jnp.einsum('bqd,bkd->bqk', q, k,
                       preferred_element_type=jnp.float32)
        s = s * jnp.float32(scale) + bias
        m = jnp.max(s, axis=-1, keepdims=True)
        p = jnp.exp(s - m)
        p = p / jnp.sum(p, axis=-1, keepdims=True)          # exact division
        o = jnp.einsum('bqk,bkd->bqd', p.astype(jnp.bfloat16), v,
                       preferred_element_type=jnp.float32)
        o_ref[:, :, h * dh:(h + 1) * dh] = o.astype(o_ref.dtype)


def _pick_batch_tile(batch, seq_len, d_model, target_bytes=2 << 20):
    per_row = seq_len * 3 * d_model * 2 + seq_len * seq_len * 4
    bb = int(max(1, min(target_bytes // per_row, 8, batch)))
    while batch % bb != 0:
        bb -= 1
    return bb


def attention(qkv, mask_bias, *, batch, seq_len, n_heads, d_model):
    qkv_b = qkv.reshape(batch, seq_len, 3 * d_model)
    bb = _pick_batch_tile(batch, seq_len, d_model)
    dh = d_model // n_heads
    out = pl.pallas_call(
        functools.partial(_attention_kernel, n_heads=n_heads,
                          scale=1.0 / math.sqrt(dh)),
        grid=(batch // bb,),
        in_specs=[
            pl.BlockSpec((bb, seq_len, 3 * d_model), lambda b: (b, 0, 0)),
            pl.BlockSpec((bb, 1, seq_len), lambda b: (b, 0, 0)),
        ],
        out_specs=pl.BlockSpec((bb, seq_len, d_model), lambda b: (b, 0, 0)),
        out_shape=jax.ShapeDtypeStruct((batch, seq_len, d_model), jnp.bfloat16),
        compiler_params=pltpu.CompilerParams(
            dimension_semantics=("parallel",),
            vmem_limit_bytes=_VMEM_LIMIT),
    )(qkv_b, mask_bias)
    return out.reshape(batch * seq_len, d_model)


# ----------------------------------------------------------------------------
# parameters (deterministic, PyTorch-like shapes/init; weights stored bf16)
# ----------------------------------------------------------------------------
def _linear_init(key, fan_in, fan_out):
    k1, k2 = jax.random.split(key)
    bound = 1.0 / math.sqrt(fan_in)
    w = jax.random.uniform(k1, (fan_in, fan_out), jnp.float32, -bound, bound)
    b = jax.random.uniform(k2, (fan_out,), jnp.float32, -bound, bound)
    return w.astype(jnp.bfloat16), b


def fixed_pos_encoding(max_len, d_model):
    position = jnp.arange(max_len, dtype=jnp.float32)[:, None]
    div_term = jnp.exp(jnp.arange(0, d_model, 2, dtype=jnp.float32)
                       * (-math.log(10000.0) / d_model))
    pe = jnp.zeros((max_len, d_model), jnp.float32)
    pe = pe.at[:, 0::2].set(jnp.sin(position * div_term))
    pe = pe.at[:, 1::2].set(jnp.cos(position * div_term))
    return pe


def init_params(key, feat_dim, max_len, d_model, num_layers, dim_ff):
    keys = jax.random.split(key, 2 + num_layers)
    params = {}
    params["proj_w"], params["proj_b"] = _linear_init(keys[0], feat_dim, d_model)
    params["out_w"], params["out_b"] = _linear_init(keys[1], d_model, feat_dim)
    params["pe"] = fixed_pos_encoding(max_len, d_model)
    layers = []
    for li in range(num_layers):
        lk = jax.random.split(keys[2 + li], 4)
        in_w, in_b = _linear_init(lk[0], d_model, 3 * d_model)   # MHA in_proj (x @ W)
        op_w, op_b = _linear_init(lk[1], d_model, d_model)       # MHA out_proj
        f1_w, f1_b = _linear_init(lk[2], d_model, dim_ff)        # linear1
        f2_w, f2_b = _linear_init(lk[3], dim_ff, d_model)        # linear2
        layers.append(dict(
            in_w=in_w, in_b=in_b, out_w=op_w, out_b=op_b,
            ff1_w=f1_w, ff1_b=f1_b, ff2_w=f2_w, ff2_b=f2_b,
            bn1_g=jnp.ones((d_model,), jnp.float32),
            bn1_b=jnp.zeros((d_model,), jnp.float32),
            bn2_g=jnp.ones((d_model,), jnp.float32),
            bn2_b=jnp.zeros((d_model,), jnp.float32),
        ))
    params["layers"] = layers
    return params


# ----------------------------------------------------------------------------
# full forward pass
# ----------------------------------------------------------------------------
def ts_transformer_forward(X, padding_masks, params, *, d_model, n_heads):
    B, S, F = X.shape
    M = B * S
    x = X.reshape(M, F).astype(jnp.float32)

    # key_padding_mask = ~padding_masks -> finite additive bias on padded keys
    mask_bias = jnp.where(padding_masks, 0.0, _NEG_INF).astype(jnp.float32)
    mask_bias = mask_bias.reshape(B, 1, S)

    # input projection * sqrt(d_model) + fixed positional encoding (PE tile selected via
    # the grid index_map -> never materialized at (B*S, D) unless S not 8-aligned)
    if S % 8 == 0 or B == 1:
        pe_arg = params["pe"][:S]
    else:
        pe_arg = jnp.tile(params["pe"][:S], (B, 1))   # rare fallback for odd seq lengths

    h0 = matmul_fused(x, params["proj_w"], params["proj_b"],
                      pe=pe_arg, scale=math.sqrt(d_model))

    # layer state: the "logical" activation is bn_prev(y); for the first layer the
    # projection output h0 is used directly (no BN).
    y, bn_prev = h0, None

    for lp in params["layers"]:
        # --- multi-head self attention ---
        qkv = matmul_fused(y, lp["in_w"], lp["in_b"], bn=bn_prev)            # (M, 3D)
        attn = attention(qkv, mask_bias, batch=B, seq_len=S,
                         n_heads=n_heads, d_model=d_model)

        # out_proj + residual + BN1 statistics, fused
        y1, stats1 = matmul_residual_stats(attn, lp["out_w"], lp["out_b"], y,
                                           res_bn=bn_prev)
        bn1 = _bn_affine(stats1, lp["bn1_g"], lp["bn1_b"], M)

        # --- feed-forward: gelu(BN1(y1) @ W1 + b1) ---
        ff = matmul_fused(y1, lp["ff1_w"], lp["ff1_b"], bn=bn1, post_gelu=True)

        # ff2 + residual BN1(y1) + BN2 statistics, fused
        y2, stats2 = matmul_residual_stats(ff, lp["ff2_w"], lp["ff2_b"], y1,
                                           res_bn=bn1)
        bn2 = _bn_affine(stats2, lp["bn2_g"], lp["bn2_b"], M)

        y, bn_prev = y2, bn2

    # final: output_layer(gelu(BN2(y)))
    out = matmul_fused(y, params["out_w"], params["out_b"], bn=bn_prev,
                       pre_gelu=True, out_dtype=jnp.float32)
    return out.reshape(B, S, F)


# ----------------------------------------------------------------------------
if __name__ == "__main__":
    # small shapes consistent with the module's forward
    B, S, FEAT = 2, 8, 4
    D_MODEL, N_HEADS, N_LAYERS, DIM_FF, MAX_LEN = 32, 4, 2, 64, 16

    key = jax.random.PRNGKey(0)
    kx, kp = jax.random.split(key)

    X = jax.random.normal(kx, (B, S, FEAT), jnp.float32)
    lengths = jnp.array([S, 5])
    padding_masks = jnp.arange(S)[None, :] < lengths[:, None]       # (B, S) bool

    params = init_params(kp, FEAT, MAX_LEN, D_MODEL, N_LAYERS, DIM_FF)

    out = ts_transformer_forward(X, padding_masks, params,
                                 d_model=D_MODEL, n_heads=N_HEADS)
    out = jax.block_until_ready(out)

    assert out.shape == (B, S, FEAT)
    assert bool(jnp.all(jnp.isfinite(out)))
    print("KERNEL_OK")
</pallas_src>

<mosaic_0001>
module attributes {stable_mosaic.version = 11 : i64} {
  func.func @_matmul_kernel(%arg0: i32, %arg1: i32, %arg2: i32, %arg3: memref<8x4xf32, #tpu.memory_space<vmem>>, %arg4: memref<4x32xbf16, #tpu.memory_space<vmem>>, %arg5: memref<1x32xf32, #tpu.memory_space<vmem>>, %arg6: memref<8x32xf32, #tpu.memory_space<vmem>>, %arg7: memref<8x32xbf16, #tpu.memory_space<vmem>>, %arg8: memref<8x32xf32, #tpu.memory_space<vmem>>) attributes {dimension_semantics = [#tpu.dimension_semantics<parallel>, #tpu.dimension_semantics<parallel>, #tpu.dimension_semantics<arbitrary>], iteration_bounds = array<i64: 2, 1, 1>, scalar_prefetch = 0 : i64, scratch_operands = 1 : i64, tpu.core_type = #tpu.core_type<tc>, window_params = [{transform_indices = @transform_0, window_bounds = array<i64: 8, 4>}, {transform_indices = @transform_1, window_bounds = array<i64: 4, 32>}, {transform_indices = @transform_2, window_bounds = array<i64: 1, 32>}, {transform_indices = @transform_3, window_bounds = array<i64: 8, 32>}, {transform_indices = @transform_4, window_bounds = array<i64: 8, 32>}]} {
    %c0_i32 = arith.constant 0 : i32
    %0 = arith.cmpi eq, %arg2, %c0_i32 : i32
    %1 = arith.extui %0 : i1 to i32
    %c0_i32_0 = arith.constant 0 : i32
    %2 = arith.cmpi ne, %1, %c0_i32_0 : i32
    scf.if %2 {
      %cst_10 = arith.constant 0.000000e+00 : f32
      %13 = vector.broadcast %cst_10 : f32 to vector<8x32xf32>
      %c0_11 = arith.constant 0 : index
      %c0_12 = arith.constant 0 : index
      %14 = vector.load %arg8[%c0_11, %c0_12] : memref<8x32xf32, #tpu.memory_space<vmem>>, vector<8x32xf32>
      tpu.vector_store %arg8[%c0_11, %c0_12], %13 {strides = array<i32>} : memref<8x32xf32, #tpu.memory_space<vmem>>, vector<8x32xf32>,
    } else {
    }
    %c0 = arith.constant 0 : index
    %c0_1 = arith.constant 0 : index
    %3 = vector.load %arg3[%c0, %c0_1] : memref<8x4xf32, #tpu.memory_space<vmem>>, vector<8x4xf32>
    %c0_2 = arith.constant 0 : index
    %c0_3 = arith.constant 0 : index
    %4 = vector.load %arg8[%c0_2, %c0_3] : memref<8x32xf32, #tpu.memory_space<vmem>>, vector<8x32xf32>
    %5 = arith.truncf %3 : vector<8x4xf32> to vector<8x4xbf16>
    %c0_4 = arith.constant 0 : index
    %c0_5 = arith.constant 0 : index
    %6 = vector.load %arg4[%c0_4, %c0_5] : memref<4x32xbf16, #tpu.memory_space<vmem>>, vector<4x32xbf16>
    %cst = arith.constant dense<0.000000e+00> : vector<8x32xf32>
    %7 = tpu.matmul %5, %6, %cst {dimension_numbers = #tpu.dot_dimension_numbers<[1], [0], [0], [1], [0, 0, 1, 1], [], []>} : vector<8x4xbf16>, vector<4x32xbf16>, vector<8x32xf32> -> vector<8x32xf32>
    %8 = arith.addf %4, %7 : vector<8x32xf32>
    %c0_6 = arith.constant 0 : index
    %c0_7 = arith.constant 0 : index
    %9 = vector.load %arg8[%c0_6, %c0_7] : memref<8x32xf32, #tpu.memory_space<vmem>>, vector<8x32xf32>
    tpu.vector_store %arg8[%c0_6, %c0_7], %8 {strides = array<i32>} : memref<8x32xf32, #tpu.memory_space<vmem>>, vector<8x32xf32>,
    %c0_i32_8 = arith.constant 0 : i32
    %10 = arith.cmpi eq, %arg2, %c0_i32_8 : i32
    %11 = arith.extui %10 : i1 to i32
    %c0_i32_9 = arith.constant 0 : i32
    %12 = arith.cmpi ne, %11, %c0_i32_9 : i32
    scf.if %12 {
      %c0_10 = arith.constant 0 : index
      %c0_11 = arith.constant 0 : index
      %13 = vector.load %arg8[%c0_10, %c0_11] : memref<8x32xf32, #tpu.memory_space<vmem>>, vector<8x32xf32>
      %c0_12 = arith.constant 0 : index
      %c0_13 = arith.constant 0 : index
      %14 = vector.load %arg5[%c0_12, %c0_13] : memref<1x32xf32, #tpu.memory_space<vmem>>, vector<1x32xf32>
      %15 = vector.broadcast %14 : vector<1x32xf32> to vector<8x32xf32>
      %16 = arith.addf %13, %15 : vector<8x32xf32>
      %cst_14 = arith.constant 5.65685415 : f32
      %17 = vector.broadcast %cst_14 : f32 to vector<8x32xf32>
      %18 = arith.mulf %16, %17 : vector<8x32xf32>
      %c0_15 = arith.constant 0 : index
      %c0_16 = arith.constant 0 : index
      %19 = vector.load %arg6[%c0_15, %c0_16] : memref<8x32xf32, #tpu.memory_space<vmem>>, vector<8x32xf32>
      %20 = arith.addf %18, %19 : vector<8x32xf32>
      %21 = arith.truncf %20 : vector<8x32xf32> to vector<8x32xbf16>
      %c0_17 = arith.constant 0 : index
      %c0_18 = arith.constant 0 : index
      %22 = vector.load %arg7[%c0_17, %c0_18] : memref<8x32xbf16, #tpu.memory_space<vmem>>, vector<8x32xbf16>
      tpu.vector_store %arg7[%c0_17, %c0_18], %21 {strides = array<i32>} : memref<8x32xbf16, #tpu.memory_space<vmem>>, vector<8x32xbf16>,
    } else {
    }
    return
  }
  func.func @transform_0(%arg0: i32, %arg1: i32, %arg2: i32) -> (i32, i32) {
    %c0_i32 = arith.constant 0 : i32
    return %arg0, %arg2 : i32, i32
  }
  func.func @transform_1(%arg0: i32, %arg1: i32, %arg2: i32) -> (i32, i32) {
    %c0_i32 = arith.constant 0 : i32
    return %arg2, %arg1 : i32, i32
  }
  func.func @transform_2(%arg0: i32, %arg1: i32, %arg2: i32) -> (i32, i32) {
    %c0_i32 = arith.constant 0 : i32
    %c0_i32_0 = arith.constant 0 : i32
    return %c0_i32, %arg1 : i32, i32
  }
  func.func @transform_3(%arg0: i32, %arg1: i32, %arg2: i32) -> (i32, i32) {
    %c1_i32 = arith.constant 1 : i32
    %c0_i32 = arith.constant 0 : i32
    %0 = arith.cmpi eq, %c1_i32, %c0_i32 : i32
    %c1_i32_0 = arith.constant 1 : i32
    %1 = arith.select %0, %c1_i32_0, %c1_i32 : i32
    %2 = arith.remsi %arg0, %1 : i32
    %c0_i32_1 = arith.constant 0 : i32
    %3 = arith.cmpi ne, %2, %c0_i32_1 : i32
    %c0_i32_2 = arith.constant 0 : i32
    %4 = arith.cmpi slt, %2, %c0_i32_2 : i32
    %c0_i32_3 = arith.constant 0 : i32
    %5 = arith.cmpi slt, %1, %c0_i32_3 : i32
    %6 = arith.xori %4, %5 : i1
    %7 = arith.andi %6, %3 : i1
    %8 = arith.addi %2, %1 : i32
    %9 = arith.select %7, %8, %2 : i32
    %c0_i32_4 = arith.constant 0 : i32
    return %9, %arg1 : i32, i32
  }
  func.func @transform_4(%arg0: i32, %arg1: i32, %arg2: i32) -> (i32, i32) {
    %c0_i32 = arith.constant 0 : i32
    return %arg0, %arg1 : i32, i32
  }
}

</mosaic_0001>

<bundles_post_ra>
// kernel: tpu_custom_call.1
= control target key start
LH: loop header
LB: loop body
LE: loop exit
PB: predicated region body
PF: predicated region fallthrough
CT: control target
= control target key end

     0   :  { %9 = vsyncpa [#allocation4], 0  ;;  %s810_s0 = inlined_call_operand.vmem [shape: f32[16,4], index: 0, kind: input, shape index: {}]   ;;  %s811_s1 = inlined_call_operand.vmem [shape: bf16[4,32], index: 1, kind: input, shape index: {}]   ;;  %s812_s2 = inlined_call_operand.vmem [shape: f32[1,32], index: 2, kind: input, shape index: {}]   ;;  %s813_s3 = inlined_call_operand.vmem [shape: f32[8,32], index: 3, kind: input, shape index: {}]   ;;  %s814_s4 = inlined_call_operand.hbm [shape: bf16[16,32], index: 4, kind: output, shape index: {}]  }
   0x1   :  { %11 = vsyncpa [#allocation4 + $0x1], 0  ;;  %s687_s15 = smov 0   ;;  %s689_s16 = smov 0  }
   0x2   :  { %s691_s17 = smov 0   ;;  %s693_s18 = smov 0  }
   0x3   :  { %s695_s19 = smov 0   ;;  %s697_s20 = smov 0  }
   0x4 LB: > { %s498_s21 = sadd.s32 4294967295, %s657_s20   ;;  %s499_s22 = sadd.s32 4294967294, %s657_s20   ;;  %s657_s20 = sphi %s697_s20, %s17_s20   ;;  %s653_s19 = sphi %s695_s19, %s821_s19   ;;  %s649_s18 = sphi %s693_s18, %s820_s18   ;;  %s645_s17 = sphi %s691_s17, %s819_s17   ;;  %s641_s16 = sphi %s689_s16, %s818_s16   ;;  %s637_s15 = sphi %s687_s15, %s817_s15  }
   0x5   : > { %s36_s23 = sadd.s32 1, %s653_s19  ;;  %s153_s24 = sadd.s32 1, %s645_s17 }
   0x6   : > { %p38_p0 = scmp.ge.s32.totalorder %s36_s23, 2  ;;  %p163_p1 = scmp.ne.s32.totalorder %s645_s17, %s641_s16 }
   0x7   : > { %p164_p2 = scmp.eq.s32.totalorder %s498_s21, 1  ;;  %p169_p3 = scmp.ne.s32.totalorder %s641_s16, %s637_s15 }
   0x8   : > { %s823_s23 = smov (%p38_p0, %s36_s23), 0  ;;  %p170_p5 = scmp.eq.s32.totalorder %s499_s22, 1 }
   0x9   : > { %p727_p4 = por %p164_p2, %p163_p1  ;;  %s148_s26 = ssub.s32 %s653_s19, %s823_s23 }
   0xa   : > { %p505_p6 = scmp.ge.s32.totalorder %s657_s20, 1  ;;  %p151_p7 = scmp.eq.s32.totalorder %s148_s26, 0 }
   0xb   : > { %p734_p8 = por %p170_p5, %p169_p3  ;;  %p221_p9 = scmp.lt.s32.totalorder %s657_s20, 3 }
   0xc   : > { %s740_s28 = scalar_select %p151_p7, %s645_s17, %s153_s24  }
   0xd   : > { %p222_p10 = pnand %p505_p6, %p221_p9 }
   0xe   : > { %vm289_vm0 = vcmask (!%p222_p10), 261120   ;;  %v294_v0 = vld [vmem:[%s811_s1] sm:$0x3] (!%p222_p10)  ;;  %vm299_vm1 = vcmask (!%p222_p10), 1041408   ;;  %v659_v1 = vmov (!%p222_p10), 0.0   ;;  %vm660_vm2 = vmmov (!%p222_p10), 0  }
   0xf   : > { %225 = sbr.rel (%p222_p10) target bundleno = 273 (0x111), region = 36  ;;  %290 = vst.msk [vmem:[#allocation2] sm:$0xff] (!%p222_p10), %vm289_vm0, %v659_v1  ;;  %516 = vmatprep.subr.bf16.mxu0 (!%p222_p10), %v659_v1  ;;  %v301_v2 = vsel (!%p222_p10), %vm299_vm1, %v294_v0, 0  ;;  %518 = vmatprep.mubr.msk.bf16.mxu0 (!%p222_p10), %vm660_vm2, %v659_v1  ;;  %p263_p11 = scmp.lt.s32.totalorder (!%p222_p10), %s649_s18, 1  ;;  %vm295_vm3 = vcmask (!%p222_p10), 31744   ;;  %v359_v14 = vld [vmem:[%s813_s3] sm:$0xff] (!%p222_p10) }
  0x10   : > { %517 = vmatpush3.bf16.msra.mxu0 (!%p222_p10), %v301_v2  ;;  %s260_s10 = sand.u32 (!%p222_p10), 1, %s641_s16   ;;  %v509_v11 = vld [vmem:[%s812_s2] ss:$0 sm:$0xff] (!%p222_p10)  ;;  %s511_s22 = sshll.u32 (!%p222_p10), %s649_s18, 6  ;;  %vm362_vm4 = vcmask (!%p222_p10), 257024  }
  0x11   : > { %s506_s11 = sshll.u32 (!%p222_p10), %s260_s10, 2 }
  0x12   : > { %s262_s24 = scalar_lea.vmem (!%p222_p10), [#allocation3], %s506_s11 }
  0x13   : > { %s379_s26 = sshll.u32 (!%p222_p10), %s262_s24, 4  ;;  %s765_s26 = int_to_ptr.vmem [resolvable:$true] %s379_s26 }
  0x14   : > { %s579_s7 = scalar_lea.vmem (!%p222_p10), %s765_s26, 64 }
  0x15   : > { %p580_p12 = scmp.ne.s32.totalorder (!%p222_p10), %s765_s26, %s579_s7 }
  0x16   : > { %s264_s5 = scalar_select %p263_p11, %s649_s18, 1  ;;  %v292_v5 = vld [vmem:[#allocation2] sm:$0xff] }
  0x17   : > { %p581_p13 = pnand %p580_p12, %p727_p4  ;;  %s661_s18 = smov [#allocation3]  }
  0x18   : > { %s507_s6 = sshll.u32 %s264_s5, 3  ;;  %s763_s5 = scalar_lea.hbm %s814_s4, %s511_s22 }
  0x19   : > { %s269_s9 = scalar_lea.vmem %s810_s0, %s507_s6  ;;  %s365_s6 = scalar_lea.sflag [#allocation4], %s260_s10 }
  0x1a   : > { %v291_v3 = vld [vmem:[%s269_s9] sm:$0xff]  ;;  %p582_p0 = pneg %p581_p13  ;;  %s583_s8 = sshll.u32 %s661_s18, 4  ;;  %s584_s8 = int_to_ptr.vmem [resolvable:$false] %s583_s8 }
  0x1b   : > { %v293_v4 = vpack.c.bf16 %v291_v3, %v291_v3  ;;  %s585_s9 = scalar_lea.vmem %s584_s8, 128  ;;  %p586_p1 = scmp.lt.s32.totalorder %s765_s26, %s584_s8 }
  0x1c   : > { %p587_p2 = scmp.lt.s32.totalorder %s585_s9, %s579_s7 }
  0x1d   : > { %519 = vmatmul.mubr.msk.bf16.vlgmr.msra.gmra.mrb[0].mxu0 %vm295_vm3, %v293_v4 }
  0x1e   : > { %p588_p3 = por %p587_p2, %p586_p1 }
  0x20   : > { %p589_p5 = pnand %p588_p3, %p582_p0 }
  0xf0   : > { %v337_v6 = vpop.f32.mrb[0].mxu0 }
  0xf1   : > { %v343_v7 = vadd.f32 %v337_v6, %v292_v5  ;;  %v520_v8 = vpop.f32.mrb[1].mxu0 }
  0xf2   : > { %v340_v9 = vpop.f32.mrb[2].mxu0 }
  0xf3   : > { %345 = vst.msk [vmem:[#allocation2] sm:$0xff] %vm289_vm0, %v343_v7  ;;  %v521_v10 = vpop.f32.mrb[3].mxu0 }
  0xfa   : > { %v349_v12 = vld [vmem:[#allocation2] sm:$0xff] }
  0xfb   : > { %v357_v13 = vadd.f32 %v509_v11, %v349_v12 }
  0xfd   : > { %v358_v15 = vmul.f32 5.656854, %v357_v13 }
  0xff   : > { %v360_v16 = vadd.f32 %v359_v14, %v358_v15 }
 0x101   : > { %v361_v17 = vpack.c.bf16 %v360_v16, %v360_v16 }
 0x103   : > { %363 = vst.msk [vmem:[%s262_s24] sm:$0xf] %vm362_vm4, %v361_v17 }
 0x104   : > { %592 = shalt.err (!%p589_p5)
}
 0x105   : > { %s593_s10 = scalar_lea.hbm %s763_s5, 64  ;;  %s597_s13 = scalar_lea.hbm %s814_s4, 128 }
 0x106   : > { %p594_p6 = scmp.ne.s32.totalorder %s763_s5, %s593_s10  ;;  %p598_p10 = scmp.lt.u32.totalorder %s763_s5, %s814_s4 }
 0x107   : > { %p599_p11 = scmp.lt.u32.totalorder %s597_s13, %s593_s10  ;;  %p601_p13 = scmp.lt.u32.totalorder %s593_s10, %s763_s5 }
 0x108   : > { %p595_p7 = pnand %p594_p6, %p727_p4 }
 0x109   : > { %p600_p12 = por %p599_p11, %p598_p10 }
 0x10a   : > { %p596_p9 = pneg %p595_p7 }
 0x10b   : > { %p602_p0 = por %p601_p13, %p600_p12 }
 0x10d   : > { %p603_p1 = pnand %p602_p0, %p596_p9 }
 0x10f   : > { %606 = shalt.err (!%p603_p1)
}
 0x110   : > { %522 = dma.vmem_to_hbm [thread:$0]  (%p727_p4), %s765_s26, 64, %s763_s5, %s365_s6  }
 0x111 PF: > { %p528_p2 = scmp.ge.s32.totalorder %s657_s20, 2  ;;  %s391_s22 = sand.u32 1, %s637_s15  }
 0x112   : > { %s392_s24 = scalar_lea.sflag [#allocation4], %s391_s22 }
 0x113   : > { %p525_p3 = pnand %p528_p2, %p734_p8 }
 0x115   : > { %632 = dma.done.wait (!%p525_p3), %s392_s24, 64  }
 0x116   : > { %634 = vsyncadd (!%p525_p3), %s392_s24, 4294967232  ;;  %s17_s20 = sadd.s32 1, %s657_s20   ;;  %s817_s15 = smov %s641_s16 }
 0x117   : > { %p14_p5 = scmp.ge.s32.totalorder %s17_s20, 4   ;;  %s818_s16 = smov %s645_s17 }
 0x118   : > { %s819_s17 = smov %s740_s28  ;;  %s820_s18 = smov %s653_s19 }
 0x119   : > { %s821_s19 = smov %s823_s23  ;;  %16 = sbr.rel (!%p14_p5) target bundleno = 4 (0x4), region = 88 }
 0x120   :  { %397 = vsyncpa [#allocation4], 1 }
 0x121   :  { %399 = vsyncpa [#allocation4 + $0x1], 1 }

</bundles_post_ra>
